<compile_context>
chip_gen: v5e
topology: v5e:2x2
jax: 0.10.0
libtpu: 0.0.40
codegen_flags: <defaults>
</compile_context>

<pallas_src>
from functools import partial

import jax
import jax.numpy as jnp
from jax.experimental import pallas as pl
from jax.experimental.pallas import tpu as pltpu


_LANE = 128     # lane width (last dim of every VMEM tile)
_TS_MAX = 512   # rows per grid step at scale: 512*128 f32 = 256 KiB per input tile


def _tiling(n):
    """Choose (rows_per_tile, grid, rows_padded, elems_padded) for batch size n."""
    rows = -(-n // _LANE)                      # ceil(N / 128)
    rows = max(rows, 1)
    if rows <= _TS_MAX:
        ts, g = rows, 1                        # single step, block == full array
    else:
        ts = _TS_MAX                           # multiple of 8 -> (8,128) rule satisfied
        g = -(-rows // ts)
    rows_padded = ts * g
    return ts, g, rows_padded, rows_padded * _LANE


def _lane_major(v, n_pad):
    """(N,) or (N,1) -> zero-padded, lane-dense (rows, 128) layout."""
    v = v.reshape(-1)
    v = jnp.pad(v, (0, n_pad - v.shape[0]))
    return v.reshape(-1, _LANE)


# ---------------------------------------------------------------------------
# Kernels
# ---------------------------------------------------------------------------
def _tensor_kernel(w_ref, b_ref, x0_ref, x1_ref, out_ref):
    # w_ref: SMEM (2,), b_ref: SMEM (1,); x0/x1/out: VMEM (TS, 128) tiles.
    y = x0_ref[...] * w_ref[0] + x1_ref[...] * w_ref[1] + b_ref[0]   # pure VPU
    out_ref[...] = y.astype(out_ref.dtype)


def _loss_kernel(w_ref, b_ref, x0_ref, x1_ref, lab_ref, loss_ref, acc_ref, *, n, ts):
    # Loss-only path: never materializes the outputs tensor.
    step = pl.program_id(0)

    @pl.when(step == 0)
    def _():
        acc_ref[0] = jnp.float32(0.0)

    y = x0_ref[...] * w_ref[0] + x1_ref[...] * w_ref[1] + b_ref[0]   # (TS, 128)
    diff = lab_ref[...] - y

    # Mask zero-padded tail elements (global flat index >= true N).
    row = jax.lax.broadcasted_iota(jnp.int32, diff.shape, 0)
    col = jax.lax.broadcasted_iota(jnp.int32, diff.shape, 1)
    gidx = (step * ts + row) * _LANE + col
    diff = jnp.where(gidx < n, diff, 0.0)

    acc_ref[0] += jnp.sum(diff)                # cross-step reduction in SMEM

    @pl.when(step == pl.num_programs(0) - 1)
    def _():
        loss_ref[0] = acc_ref[0]


# ---------------------------------------------------------------------------
# Jitted launchers (stacking + relayout fuse with the pallas_call dispatch)
# ---------------------------------------------------------------------------
_SMEM = pl.BlockSpec(memory_space=pltpu.MemorySpace.SMEM)


@jax.jit
def _forward_tensor(inputs_tuple, weight, bias):
    x = jnp.stack(inputs_tuple).astype(jnp.float32)            # (N, 2)
    n = x.shape[0]
    ts, g, _, n_pad = _tiling(n)
    x0 = _lane_major(x[:, 0], n_pad)                           # (rows, 128)
    x1 = _lane_major(x[:, 1], n_pad)
    w = weight.reshape(-1).astype(jnp.float32)                 # (2,)
    b = bias.reshape(-1).astype(jnp.float32)                   # (1,)
    blk = pl.BlockSpec((ts, _LANE), lambda i: (i, 0))
    y = pl.pallas_call(
        _tensor_kernel,
        out_shape=jax.ShapeDtypeStruct((ts * g, _LANE), jnp.float32),
        grid=(g,),
        in_specs=[_SMEM, _SMEM, blk, blk],
        out_specs=blk,
        compiler_params=pltpu.CompilerParams(dimension_semantics=("parallel",)),
    )(w, b, x0, x1)
    return y.reshape(n_pad)[:n].reshape(n, 1)                  # back to (N, 1)


@jax.jit
def _forward_loss(inputs_tuple, labels_tuple, weight, bias):
    x = jnp.stack(inputs_tuple).astype(jnp.float32)            # (N, 2)
    labels = jnp.stack(labels_tuple).astype(jnp.float32)       # (N, 1)
    n = x.shape[0]
    ts, g, _, n_pad = _tiling(n)
    x0 = _lane_major(x[:, 0], n_pad)
    x1 = _lane_major(x[:, 1], n_pad)
    lab = _lane_major(labels, n_pad)
    w = weight.reshape(-1).astype(jnp.float32)
    b = bias.reshape(-1).astype(jnp.float32)
    blk = pl.BlockSpec((ts, _LANE), lambda i: (i, 0))
    loss = pl.pallas_call(
        partial(_loss_kernel, n=n, ts=ts),
        out_shape=jax.ShapeDtypeStruct((1,), jnp.float32),     # scalar loss only
        grid=(g,),
        in_specs=[_SMEM, _SMEM, blk, blk, blk],
        out_specs=_SMEM,                                       # SMEM scalar output
        scratch_shapes=[pltpu.SMEM((1,), jnp.float32)],        # cross-step accumulator
        compiler_params=pltpu.CompilerParams(dimension_semantics=("arbitrary",)),
    )(w, b, x0, x1, lab)
    return loss[0]


# ---------------------------------------------------------------------------
# Public wrapper mirroring ToyModel2.forward
# ---------------------------------------------------------------------------
def toy_model2_forward(inputs_list, data_sample_list, weight, bias, mode="tensor"):
    """Pallas implementation of ToyModel2.forward.

    inputs_list      : list of (2,) float32 arrays
    data_sample_list : list of (1,) float32 arrays
    weight           : (1, 2) float32  (nn.Linear(2, 1).weight)
    bias             : (1,)   float32  (nn.Linear(2, 1).bias)

    ToyModel2 also owns an unused `linear1` (forward never touches it), so it
    is not materialized here.
    """
    inputs_tuple = tuple(inputs_list)
    if mode == "loss":
        loss = _forward_loss(inputs_tuple, tuple(data_sample_list), weight, bias)
        return {"loss": loss}
    # 'tensor' and any other mode return the raw outputs (matches PyTorch code).
    return _forward_tensor(inputs_tuple, weight, bias)


if __name__ == "__main__":
    key = jax.random.PRNGKey(0)
    k_w, k_b, k_x, k_y = jax.random.split(key, 4)

    # Deterministic parameters for nn.Linear(2, 1): weight (1, 2), bias (1,).
    bound = 1.0 / jnp.sqrt(2.0)  # PyTorch Linear init bound = 1/sqrt(fan_in)
    weight = jax.random.uniform(k_w, (1, 2), jnp.float32, -bound, bound)
    bias = jax.random.uniform(k_b, (1,), jnp.float32, -bound, bound)

    # Small batch consistent with the module: 8 samples, each input a length-2
    # vector and each data_sample a length-1 label.
    N = 8
    xs = jax.random.normal(k_x, (N, 2), jnp.float32)
    ys = jax.random.normal(k_y, (N, 1), jnp.float32)
    inputs_list = [xs[i] for i in range(N)]
    data_sample_list = [ys[i] for i in range(N)]

    # mode='tensor' path
    outputs = toy_model2_forward(inputs_list, data_sample_list, weight, bias,
                                 mode="tensor")
    outputs = jax.block_until_ready(outputs)

    # mode='loss' path (loss-only kernel, scalar SMEM output)
    loss_out = toy_model2_forward(inputs_list, data_sample_list, weight, bias,
                                  mode="loss")
    loss_val = jax.block_until_ready(loss_out["loss"])

    # References (plain JAX) for the same math.
    ref_out = xs @ weight.T + bias.reshape(1, 1)
    ref_loss = jnp.sum(ys - ref_out)
    assert outputs.shape == (N, 1)
    assert jnp.allclose(outputs, ref_out, atol=1e-5, rtol=1e-5)
    assert jnp.allclose(loss_val, ref_loss, atol=1e-5, rtol=1e-5)

    # Second check crossing a 128-lane row boundary (exercises multi-row tiles
    # and the padded-tail mask in the loss kernel).
    N2 = 136
    xs2 = jax.random.normal(jax.random.PRNGKey(1), (N2, 2), jnp.float32)
    ys2 = jax.random.normal(jax.random.PRNGKey(2), (N2, 1), jnp.float32)
    in2 = [xs2[i] for i in range(N2)]
    ds2 = [ys2[i] for i in range(N2)]
    out2 = jax.block_until_ready(
        toy_model2_forward(in2, ds2, weight, bias, mode="tensor"))
    loss2 = jax.block_until_ready(
        toy_model2_forward(in2, ds2, weight, bias, mode="loss")["loss"])
    ref_out2 = xs2 @ weight.T + bias.reshape(1, 1)
    ref_loss2 = jnp.sum(ys2 - ref_out2)
    assert out2.shape == (N2, 1)
    assert jnp.allclose(out2, ref_out2, atol=1e-5, rtol=1e-5)
    assert jnp.allclose(loss2, ref_loss2, atol=1e-4, rtol=1e-5)

    print("KERNEL_OK")
</pallas_src>

<mosaic_0001>
module attributes {stable_mosaic.version = 11 : i64} {
  func.func @_tensor_kernel(%arg0: i32, %arg1: memref<2xf32, #tpu.memory_space<smem>>, %arg2: memref<1xf32, #tpu.memory_space<smem>>, %arg3: memref<1x128xf32, #tpu.memory_space<vmem>>, %arg4: memref<1x128xf32, #tpu.memory_space<vmem>>, %arg5: memref<1x128xf32, #tpu.memory_space<vmem>>) attributes {dimension_semantics = [#tpu.dimension_semantics<parallel>], iteration_bounds = array<i64: 1>, scalar_prefetch = 0 : i64, scratch_operands = 0 : i64, tpu.core_type = #tpu.core_type<tc>, window_params = [{transform_indices = @transform_0, window_bounds = array<i64: 2>}, {transform_indices = @transform_1, window_bounds = array<i64: 1>}, {transform_indices = @transform_2, window_bounds = array<i64: 1, 128>}, {transform_indices = @transform_3, window_bounds = array<i64: 1, 128>}, {transform_indices = @transform_4, window_bounds = array<i64: 1, 128>}]} {
    %c0 = arith.constant 0 : index
    %c0_0 = arith.constant 0 : index
    %0 = vector.load %arg3[%c0, %c0_0] : memref<1x128xf32, #tpu.memory_space<vmem>>, vector<1x128xf32>
    %c0_1 = arith.constant 0 : index
    %1 = memref.load %arg1[%c0_1] : memref<2xf32, #tpu.memory_space<smem>>
    %2 = vector.broadcast %1 : f32 to vector<1x128xf32>
    %3 = arith.mulf %0, %2 : vector<1x128xf32>
    %c0_2 = arith.constant 0 : index
    %c0_3 = arith.constant 0 : index
    %4 = vector.load %arg4[%c0_2, %c0_3] : memref<1x128xf32, #tpu.memory_space<vmem>>, vector<1x128xf32>
    %c1 = arith.constant 1 : index
    %5 = memref.load %arg1[%c1] : memref<2xf32, #tpu.memory_space<smem>>
    %6 = vector.broadcast %5 : f32 to vector<1x128xf32>
    %7 = arith.mulf %4, %6 : vector<1x128xf32>
    %8 = arith.addf %3, %7 : vector<1x128xf32>
    %c0_4 = arith.constant 0 : index
    %9 = memref.load %arg2[%c0_4] : memref<1xf32, #tpu.memory_space<smem>>
    %10 = vector.broadcast %9 : f32 to vector<1x128xf32>
    %11 = arith.addf %8, %10 : vector<1x128xf32>
    %c0_5 = arith.constant 0 : index
    %c0_6 = arith.constant 0 : index
    %12 = vector.load %arg5[%c0_5, %c0_6] : memref<1x128xf32, #tpu.memory_space<vmem>>, vector<1x128xf32>
    tpu.vector_store %arg5[%c0_5, %c0_6], %11 {strides = array<i32>} : memref<1x128xf32, #tpu.memory_space<vmem>>, vector<1x128xf32>,
    return
  }
  func.func @transform_0(%arg0: i32) -> i32 {
    %c0_i32 = arith.constant 0 : i32
    %c0_i32_0 = arith.constant 0 : i32
    return %c0_i32 : i32
  }
  func.func @transform_1(%arg0: i32) -> i32 {
    %c0_i32 = arith.constant 0 : i32
    %c0_i32_0 = arith.constant 0 : i32
    return %c0_i32 : i32
  }
  func.func @transform_2(%arg0: i32) -> (i32, i32) {
    %c0_i32 = arith.constant 0 : i32
    %c0_i32_0 = arith.constant 0 : i32
    return %arg0, %c0_i32 : i32, i32
  }
  func.func @transform_3(%arg0: i32) -> (i32, i32) {
    %c0_i32 = arith.constant 0 : i32
    %c0_i32_0 = arith.constant 0 : i32
    return %arg0, %c0_i32 : i32, i32
  }
  func.func @transform_4(%arg0: i32) -> (i32, i32) {
    %c0_i32 = arith.constant 0 : i32
    %c0_i32_0 = arith.constant 0 : i32
    return %arg0, %c0_i32 : i32, i32
  }
}

</mosaic_0001>

<bundles_post_ra>
// kernel: _forward_tensor.1
= control target key start
LH: loop header
LB: loop body
LE: loop exit
PB: predicated region body
PF: predicated region fallthrough
CT: control target
= control target key end

     0   :  { %10 = vsyncpa [#allocation4], 0  ;;  %s65_s18 = smov [#allocation3]   ;;  %s106_s0 = inlined_call_operand.vmem [shape: f32[2], index: 0, kind: input, shape index: {}]   ;;  %s107_s1 = inlined_call_operand.<no memory space> [shape: f32[1], index: 1, kind: input, shape index: {}]   ;;  %s108_s2 = inlined_call_operand.vmem [shape: f32[1,128], index: 2, kind: input, shape index: {}]   ;;  %s109_s3 = inlined_call_operand.vmem [shape: f32[1,128], index: 3, kind: input, shape index: {}]   ;;  %s110_s4 = inlined_call_operand.vmem [shape: f32[1,128], index: 4, kind: output, shape index: {}]  }
   0x1   :  { %s16_s17 = sshll.u32 %s106_s0, 4  ;;  %s17_s17 = int_to_ptr.vmem [resolvable:$true] %s16_s17 }
   0x2   :  { %19 = dma.vmem_to_smem %s17_s17, 16, %s65_s18, [#allocation4]  }
   0x3   :  { %63 = dma.done.wait [#allocation4], 16  }
   0x4   :  { %64 = vsyncadd [#allocation4], 4294967280 }
   0x5   :  { %30 = sfence }
   0x6   :  { %s32_s19 = sld [smem:[#allocation3]]  ;;  %v31_v0 = vld [vmem:[%s108_s2] sm:$0x1]  ;;  %v41_v6 = vstv %s107_s1 }
   0x7   :  { %s49_s20 = sld [smem:[#allocation3 + $0x1]]  ;;  %v35_v1 = vld [vmem:[%s109_s3] sm:$0x1] }
   0xc   :  { %v33_v2 = vstv %s32_s19 }
   0xd   :  { %v34_v3 = vmul.f32 %v33_v2, %v31_v0  ;;  %v37_v4 = vstv %s49_s20 }
   0xe   :  { %v38_v5 = vmul.f32 %v37_v4, %v35_v1 }
  0x10   :  { %v39_v7 = vadd.f32 %v38_v5, %v34_v3 }
  0x12   :  { %v42_v8 = vadd.f32 %v41_v6, %v39_v7 }
  0x14   :  { %43 = vst [vmem:[%s110_s4] sm:$0x1] %v42_v8 }
  0x15   :  { %48 = vsyncpa [#allocation4], 1 }

</bundles_post_ra>
